<compile_context>
chip_gen: v6e
topology: v6e:2x2x1
jax: 0.10.0
libtpu: 0.0.40
codegen_flags: <defaults>
</compile_context>

<pallas_src>
import functools
import math

import numpy as np
import jax
import jax.numpy as jnp
from jax.experimental import pallas as pl
from jax.experimental.pallas import tpu as pltpu

_EPS = 1e-10
_NLL_CLAMP = float(-math.log(_EPS))        # torch.clamp(pdf, min=eps) in log space
_LOG_2PI = float(math.log(2.0 * math.pi))

_LANES = 128          # vreg lane width (lane-dense last dim)
_ROWS_PER_TILE = 16   # sublane rows per grid step (multiple of 8)


def _nll_kernel(yt_ref, op_ref, out_ref, acc_ref, *, n_valid):
    i = pl.program_id(0)
    rows, lanes = acc_ref.shape
    tile_elems = rows * lanes

    @pl.when(i == 0)
    def _init():
        acc_ref[...] = jnp.zeros_like(acc_ref)

    yx = yt_ref[1]            # (rows, lanes)
    yy = yt_ref[2]
    mux = op_ref[0]
    muy = op_ref[1]
    sxr = op_ref[2]           # log(sx)   (getCoef: sx = exp(raw))
    syr = op_ref[3]           # log(sy)
    corr = jnp.tanh(op_ref[4])

    inv_sx = jnp.exp(-sxr)    # multiply instead of divide
    inv_sy = jnp.exp(-syr)
    nx = (yx - mux) * inv_sx
    ny = (yy - muy) * inv_sy
    z = nx * nx + ny * ny - 2.0 * corr * nx * ny
    onemrho = 1.0 - corr * corr
    inv_onemrho = pl.reciprocal(onemrho, approx=True)   # EUP slot, approx

    # -log(pdf) in closed form; log(sx) = sxr, log(sy) = syr.
    nll = 0.5 * z * inv_onemrho + sxr + syr + 0.5 * jnp.log(onemrho) + _LOG_2PI
    # torch.clamp(pdf, min=1e-10)  <=>  nll = min(nll, -log(1e-10))
    nll = jnp.minimum(nll, _NLL_CLAMP)

    # Mask padded elements (N was padded up to a multiple of the tile size).
    base = i * tile_elems
    ridx = jax.lax.broadcasted_iota(jnp.int32, (rows, lanes), 0)
    lidx = jax.lax.broadcasted_iota(jnp.int32, (rows, lanes), 1)
    gidx = base + ridx * lanes + lidx
    nll = jnp.where(gidx < n_valid, nll, 0.0)

    acc_ref[...] += nll       # elementwise partial accumulation (VPU only)

    @pl.when(i == pl.num_programs(0) - 1)
    def _finalize():
        out_ref[0, 0] = jnp.sum(acc_ref[...])   # single cross-lane reduce at the end


def log_likelihood_loss(y_target, o_pred, *, rows_per_tile=_ROWS_PER_TILE, lanes=_LANES):
    """y_target: (B,T,P,3), o_pred: (B,T,P,5)  ->  scalar f32 loss."""
    B, T, P, _ = y_target.shape
    N = B * T * P
    tile_elems = rows_per_tile * lanes
    n_tiles = max(1, (N + tile_elems - 1) // tile_elems)
    n_pad = n_tiles * tile_elems
    rows_total = n_tiles * rows_per_tile

    # Channels-first, lane-dense repack: 2 contiguous inputs instead of 7 strided slices.
    yt = jnp.transpose(y_target.astype(jnp.float32).reshape(N, 3))   # (3, N)
    op = jnp.transpose(o_pred.astype(jnp.float32).reshape(N, 5))     # (5, N)
    yt = jnp.pad(yt, ((0, 0), (0, n_pad - N))).reshape(3, rows_total, lanes)
    op = jnp.pad(op, ((0, 0), (0, n_pad - N))).reshape(5, rows_total, lanes)

    total = pl.pallas_call(
        functools.partial(_nll_kernel, n_valid=N),
        out_shape=jax.ShapeDtypeStruct((1, 1), jnp.float32),
        grid=(n_tiles,),
        in_specs=[
            pl.BlockSpec((3, rows_per_tile, lanes), lambda i: (0, i, 0)),
            pl.BlockSpec((5, rows_per_tile, lanes), lambda i: (0, i, 0)),
        ],
        out_specs=pl.BlockSpec(memory_space=pltpu.SMEM),
        scratch_shapes=[pltpu.VMEM((rows_per_tile, lanes), jnp.float32)],
        compiler_params=pltpu.CompilerParams(dimension_semantics=("arbitrary",)),
    )(yt, op)

    # result = total_P / ped_num
    return total[0, 0] / jnp.float32(P)


def _reference(y_target, o_pred):
    """Direct JAX port of the PyTorch pdf-based formulation (validation only)."""
    mux, muy = o_pred[..., 0], o_pred[..., 1]
    sx, sy = jnp.exp(o_pred[..., 2]), jnp.exp(o_pred[..., 3])
    corr = jnp.tanh(o_pred[..., 4])
    nx = (y_target[..., 1] - mux) / sx
    ny = (y_target[..., 2] - muy) / sy
    z = nx ** 2 + ny ** 2 - 2 * corr * nx * ny
    onemrho = 1 - corr ** 2
    pdf = jnp.exp(-z / (2 * onemrho)) / (2 * np.pi * sx * sy * jnp.sqrt(onemrho))
    return jnp.sum(-jnp.log(jnp.maximum(pdf, _EPS))) / y_target.shape[2]


if __name__ == "__main__":
    key = jax.random.PRNGKey(0)
    k1, k2 = jax.random.split(key)
    B, T, P = 2, 8, 4          # batch, pred_len, ped_num
    y_target = jax.random.normal(k1, (B, T, P, 3), dtype=jnp.float32)
    o_pred = 0.5 * jax.random.normal(k2, (B, T, P, 5), dtype=jnp.float32)

    loss = jax.block_until_ready(log_likelihood_loss(y_target, o_pred))
    ref = jax.block_until_ready(_reference(y_target, o_pred))
    # Tolerance covers the approximate EUP reciprocal used for 1/(1-corr^2).
    assert np.allclose(np.asarray(loss), np.asarray(ref), rtol=2e-3, atol=1e-3), (loss, ref)
    print("KERNEL_OK")
</pallas_src>

<mosaic_0001>
module attributes {stable_mosaic.version = 11 : i64} {
  func.func @_nll_kernel(%arg0: i32, %arg1: memref<3x16x128xf32, #tpu.memory_space<vmem>>, %arg2: memref<5x16x128xf32, #tpu.memory_space<vmem>>, %arg3: memref<1x1xf32, #tpu.memory_space<smem>>, %arg4: memref<16x128xf32, #tpu.memory_space<vmem>>) attributes {dimension_semantics = [#tpu.dimension_semantics<arbitrary>], iteration_bounds = array<i64: 1>, scalar_prefetch = 0 : i64, scratch_operands = 1 : i64, tpu.core_type = #tpu.core_type<tc>, window_params = [{transform_indices = @transform_0, window_bounds = array<i64: 3, 16, 128>}, {transform_indices = @transform_1, window_bounds = array<i64: 5, 16, 128>}, {transform_indices = @transform_2, window_bounds = array<i64: 1, 1>}]} {
    %c0_i32 = arith.constant 0 : i32
    %0 = arith.cmpi eq, %arg0, %c0_i32 : i32
    %1 = arith.extui %0 : i1 to i32
    %c0_i32_0 = arith.constant 0 : i32
    %2 = arith.cmpi ne, %1, %c0_i32_0 : i32
    scf.if %2 {
      %cst_31 = arith.constant 0.000000e+00 : f32
      %71 = vector.broadcast %cst_31 : f32 to vector<16x128xf32>
      %c0_32 = arith.constant 0 : index
      %c0_33 = arith.constant 0 : index
      %72 = vector.load %arg4[%c0_32, %c0_33] : memref<16x128xf32, #tpu.memory_space<vmem>>, vector<16x128xf32>
      tpu.vector_store %arg4[%c0_32, %c0_33], %71 {strides = array<i32>} : memref<16x128xf32, #tpu.memory_space<vmem>>, vector<16x128xf32>,
    } else {
    }
    %c1 = arith.constant 1 : index
    %c0 = arith.constant 0 : index
    %c0_1 = arith.constant 0 : index
    %3 = vector.load %arg1[%c1, %c0, %c0_1] : memref<3x16x128xf32, #tpu.memory_space<vmem>>, vector<1x16x128xf32>
    %4 = vector.shape_cast %3 : vector<1x16x128xf32> to vector<16x128xf32>
    %c2 = arith.constant 2 : index
    %c0_2 = arith.constant 0 : index
    %c0_3 = arith.constant 0 : index
    %5 = vector.load %arg1[%c2, %c0_2, %c0_3] : memref<3x16x128xf32, #tpu.memory_space<vmem>>, vector<1x16x128xf32>
    %6 = vector.shape_cast %5 : vector<1x16x128xf32> to vector<16x128xf32>
    %c0_4 = arith.constant 0 : index
    %c0_5 = arith.constant 0 : index
    %c0_6 = arith.constant 0 : index
    %7 = vector.load %arg2[%c0_4, %c0_5, %c0_6] : memref<5x16x128xf32, #tpu.memory_space<vmem>>, vector<1x16x128xf32>
    %8 = vector.shape_cast %7 : vector<1x16x128xf32> to vector<16x128xf32>
    %c1_7 = arith.constant 1 : index
    %c0_8 = arith.constant 0 : index
    %c0_9 = arith.constant 0 : index
    %9 = vector.load %arg2[%c1_7, %c0_8, %c0_9] : memref<5x16x128xf32, #tpu.memory_space<vmem>>, vector<1x16x128xf32>
    %10 = vector.shape_cast %9 : vector<1x16x128xf32> to vector<16x128xf32>
    %c2_10 = arith.constant 2 : index
    %c0_11 = arith.constant 0 : index
    %c0_12 = arith.constant 0 : index
    %11 = vector.load %arg2[%c2_10, %c0_11, %c0_12] : memref<5x16x128xf32, #tpu.memory_space<vmem>>, vector<1x16x128xf32>
    %12 = vector.shape_cast %11 : vector<1x16x128xf32> to vector<16x128xf32>
    %c3 = arith.constant 3 : index
    %c0_13 = arith.constant 0 : index
    %c0_14 = arith.constant 0 : index
    %13 = vector.load %arg2[%c3, %c0_13, %c0_14] : memref<5x16x128xf32, #tpu.memory_space<vmem>>, vector<1x16x128xf32>
    %14 = vector.shape_cast %13 : vector<1x16x128xf32> to vector<16x128xf32>
    %c4 = arith.constant 4 : index
    %c0_15 = arith.constant 0 : index
    %c0_16 = arith.constant 0 : index
    %15 = vector.load %arg2[%c4, %c0_15, %c0_16] : memref<5x16x128xf32, #tpu.memory_space<vmem>>, vector<1x16x128xf32>
    %16 = vector.shape_cast %15 : vector<1x16x128xf32> to vector<16x128xf32>
    %17 = math.tanh %16 : vector<16x128xf32>
    %cst = arith.constant 0.000000e+00 : f32
    %18 = vector.broadcast %cst : f32 to vector<16x128xf32>
    %19 = arith.subf %18, %12 : vector<16x128xf32>
    %20 = math.exp %19 : vector<16x128xf32>
    %cst_17 = arith.constant 0.000000e+00 : f32
    %21 = vector.broadcast %cst_17 : f32 to vector<16x128xf32>
    %22 = arith.subf %21, %14 : vector<16x128xf32>
    %23 = math.exp %22 : vector<16x128xf32>
    %24 = arith.subf %4, %8 : vector<16x128xf32>
    %25 = arith.mulf %24, %20 : vector<16x128xf32>
    %26 = arith.subf %6, %10 : vector<16x128xf32>
    %27 = arith.mulf %26, %23 : vector<16x128xf32>
    %28 = arith.mulf %25, %25 : vector<16x128xf32>
    %29 = arith.mulf %27, %27 : vector<16x128xf32>
    %30 = arith.addf %28, %29 : vector<16x128xf32>
    %cst_18 = arith.constant 2.000000e+00 : f32
    %31 = vector.broadcast %cst_18 : f32 to vector<16x128xf32>
    %32 = arith.mulf %31, %17 : vector<16x128xf32>
    %33 = arith.mulf %32, %25 : vector<16x128xf32>
    %34 = arith.mulf %33, %27 : vector<16x128xf32>
    %35 = arith.subf %30, %34 : vector<16x128xf32>
    %36 = arith.mulf %17, %17 : vector<16x128xf32>
    %cst_19 = arith.constant 1.000000e+00 : f32
    %37 = vector.broadcast %cst_19 : f32 to vector<16x128xf32>
    %38 = arith.subf %37, %36 : vector<16x128xf32>
    %39 = tpu.reciprocal %38 {approx = true} : vector<16x128xf32> -> vector<16x128xf32>
    %cst_20 = arith.constant 5.000000e-01 : f32
    %40 = vector.broadcast %cst_20 : f32 to vector<16x128xf32>
    %41 = arith.mulf %40, %35 : vector<16x128xf32>
    %42 = arith.mulf %41, %39 : vector<16x128xf32>
    %43 = arith.addf %42, %12 : vector<16x128xf32>
    %44 = arith.addf %43, %14 : vector<16x128xf32>
    %45 = math.log %38 : vector<16x128xf32>
    %cst_21 = arith.constant 5.000000e-01 : f32
    %46 = vector.broadcast %cst_21 : f32 to vector<16x128xf32>
    %47 = arith.mulf %46, %45 : vector<16x128xf32>
    %48 = arith.addf %44, %47 : vector<16x128xf32>
    %cst_22 = arith.constant 1.83787704 : f32
    %49 = vector.broadcast %cst_22 : f32 to vector<16x128xf32>
    %50 = arith.addf %48, %49 : vector<16x128xf32>
    %cst_23 = arith.constant 23.0258503 : f32
    %51 = vector.broadcast %cst_23 : f32 to vector<16x128xf32>
    %52 = arith.minimumf %50, %51 : vector<16x128xf32>
    %c2048_i32 = arith.constant 2048 : i32
    %53 = arith.muli %arg0, %c2048_i32 : i32
    %54 = tpu.iota {dimensions = array<i32: 0>} : vector<16x128xi32>
    %55 = tpu.iota {dimensions = array<i32: 1>} : vector<16x128xi32>
    %c128_i32 = arith.constant 128 : i32
    %56 = vector.broadcast %c128_i32 : i32 to vector<16x128xi32>
    %57 = arith.muli %54, %56 : vector<16x128xi32>
    %58 = vector.broadcast %53 : i32 to vector<16x128xi32>
    %59 = arith.addi %58, %57 : vector<16x128xi32>
    %60 = arith.addi %59, %55 : vector<16x128xi32>
    %c64_i32 = arith.constant 64 : i32
    %61 = vector.broadcast %c64_i32 : i32 to vector<16x128xi32>
    %62 = arith.cmpi slt, %60, %61 : vector<16x128xi32>
    %cst_24 = arith.constant 0.000000e+00 : f32
    %63 = vector.broadcast %cst_24 : f32 to vector<16x128xf32>
    %64 = arith.select %62, %52, %63 : vector<16x128xi1>, vector<16x128xf32>
    %c0_25 = arith.constant 0 : index
    %c0_26 = arith.constant 0 : index
    %65 = vector.load %arg4[%c0_25, %c0_26] : memref<16x128xf32, #tpu.memory_space<vmem>>, vector<16x128xf32>
    %66 = arith.addf %65, %64 : vector<16x128xf32>
    %c0_27 = arith.constant 0 : index
    %c0_28 = arith.constant 0 : index
    %67 = vector.load %arg4[%c0_27, %c0_28] : memref<16x128xf32, #tpu.memory_space<vmem>>, vector<16x128xf32>
    tpu.vector_store %arg4[%c0_27, %c0_28], %66 {strides = array<i32>} : memref<16x128xf32, #tpu.memory_space<vmem>>, vector<16x128xf32>,
    %c0_i32_29 = arith.constant 0 : i32
    %68 = arith.cmpi eq, %arg0, %c0_i32_29 : i32
    %69 = arith.extui %68 : i1 to i32
    %c0_i32_30 = arith.constant 0 : i32
    %70 = arith.cmpi ne, %69, %c0_i32_30 : i32
    scf.if %70 {
      %c0_31 = arith.constant 0 : index
      %c0_32 = arith.constant 0 : index
      %71 = vector.load %arg4[%c0_31, %c0_32] : memref<16x128xf32, #tpu.memory_space<vmem>>, vector<16x128xf32>
      %72 = vector.shape_cast %71 : vector<16x128xf32> to vector<1x16x128xf32>
      %cst_33 = arith.constant dense<0.000000e+00> : vector<1xf32>
      %73 = vector.multi_reduction <add>, %72, %cst_33 [1, 2] : vector<1x16x128xf32> to vector<1xf32>
      %74 = vector.shape_cast %73 : vector<1xf32> to vector<1x1x1xf32>
      %75 = vector.extract %74[0, 0, 0] : f32 from vector<1x1x1xf32>
      %c0_34 = arith.constant 0 : index
      %c0_35 = arith.constant 0 : index
      %76 = memref.load %arg3[%c0_34, %c0_35] : memref<1x1xf32, #tpu.memory_space<smem>>
      memref.store %75, %arg3[%c0_34, %c0_35] : memref<1x1xf32, #tpu.memory_space<smem>>
    } else {
    }
    return
  }
  func.func @transform_0(%arg0: i32) -> (i32, i32, i32) {
    %c0_i32 = arith.constant 0 : i32
    %c0_i32_0 = arith.constant 0 : i32
    %c0_i32_1 = arith.constant 0 : i32
    return %c0_i32, %arg0, %c0_i32_0 : i32, i32, i32
  }
  func.func @transform_1(%arg0: i32) -> (i32, i32, i32) {
    %c0_i32 = arith.constant 0 : i32
    %c0_i32_0 = arith.constant 0 : i32
    %c0_i32_1 = arith.constant 0 : i32
    return %c0_i32, %arg0, %c0_i32_0 : i32, i32, i32
  }
  func.func @transform_2(%arg0: i32) -> (i32, i32) {
    %c0_i32 = arith.constant 0 : i32
    %c0_i32_0 = arith.constant 0 : i32
    %c0_i32_1 = arith.constant 0 : i32
    return %c0_i32, %c0_i32_0 : i32, i32
  }
}

</mosaic_0001>

<bundles_post_ra>
// kernel: tpu_custom_call.1
= control target key start
LH: loop header
LB: loop body
LE: loop exit
PB: predicated region body
PF: predicated region fallthrough
CT: control target
= control target key end

     0   :  { %7 = vsyncpa [#allocation4], 0  ;;  %s309_s0 = inlined_call_operand.hbm [shape: f32[3,16,128], index: 0, kind: input, shape index: {}]   ;;  %s310_s1 = inlined_call_operand.hbm [shape: f32[5,16,128], index: 1, kind: input, shape index: {}]   ;;  %s311_s2 = inlined_call_operand.hbm [shape: f32[1,1], index: 2, kind: output, shape index: {}]  }
   0x1   :  { %8 = vsyncpa [#allocation7], 0 }
   0x2   :  { %9 = vsyncpa [#allocation5], 0  ;;  %s264_s9 = smov [#allocation3]  }
   0x3   :  { %s15_s10 = sshll.u32 %s264_s9, 4  ;;  %s16_s10 = int_to_ptr.vmem [resolvable:$true] %s15_s10 }
   0x4   :  { %s218_s11 = scalar_lea.vmem %s16_s10, 768  ;;  %p223_p1 = scmp.lt.s32.totalorder %s16_s10, %s16_s10 }
   0x5   :  { %p219_p0 = scmp.ne.s32.totalorder %s16_s10, %s218_s11  ;;  %p224_p2 = scmp.lt.s32.totalorder %s218_s11, %s218_s11 }
   0x7   :  { %p225_p3 = por %p224_p2, %p223_p1 }
   0x9   :  { %p226_p4 = pnand %p225_p3, %p219_p0 }
   0xb   :  { %229 = shalt.err (!%p226_p4)
}
   0xc   :  { %s265_s12 = smov 128   ;;  %s266_s13 = smov 8  }
   0xd   :  { %21 = dma.hbm_to_vmem [thread:$0]  %s309_s0, 768, %s16_s10, [#allocation4], %s265_s12, %s265_s12, %s266_s13  }
   0xe   :  { %s267_s16 = smov [#allocation6]  }
   0xf   :  { %s27_s17 = sshll.u32 %s267_s16, 4  ;;  %s28_s17 = int_to_ptr.vmem [resolvable:$true] %s27_s17 }
  0x10   :  { %s238_s18 = scalar_lea.vmem %s28_s17, 1280  ;;  %p243_p6 = scmp.lt.s32.totalorder %s28_s17, %s28_s17 }
  0x11   :  { %p239_p5 = scmp.ne.s32.totalorder %s28_s17, %s238_s18  ;;  %p244_p7 = scmp.lt.s32.totalorder %s238_s18, %s238_s18 }
  0x13   :  { %p245_p8 = por %p244_p7, %p243_p6 }
  0x15   :  { %p246_p9 = pnand %p245_p8, %p239_p5 }
  0x17   :  { %249 = shalt.err (!%p246_p9)
}
  0x18   :  { %33 = dma.hbm_to_vmem [thread:$0]  %s310_s1, 1280, %s28_s17, [#allocation7], %s265_s12, %s265_s12, %s266_s13  }
  0x19   :  { %258 = dma.done.wait [#allocation4], 768  }
  0x1a   :  { %259 = vsyncadd [#allocation4], 4294966528 }
  0x1b   :  { %260 = dma.done.wait [#allocation7], 1280  }
  0x1c   :  { %261 = vsyncadd [#allocation7], 4294966016  ;;  %v290_v0 = vld [vmem:[#allocation6 + $0x20] sm:$0xff]  ;;  %v292_v1 = vld [vmem:[#allocation6 + $0x28] sm:$0xff]  ;;  %v129_v51 = vlaneseq  ;;  %s268_s1 = smov [#allocation8]  }
  0x1d   :  { %v294_v2 = vld [vmem:[#allocation6 + $0x30] sm:$0xff]  ;;  %v296_v3 = vld [vmem:[#allocation6 + $0x38] sm:$0xff]  ;;  %v68_v4 = vsub.f32 0.0, %v290_v0  ;;  %v64_v5 = vld [vmem:[#allocation6 + $0x40] sm:$0xff]  ;;  %v69_v7 = vsub.f32 0.0, %v292_v1 }
  0x1e   :  { %v65_v6 = vld [vmem:[#allocation6 + $0x48] sm:$0xff]  ;;  %v74_v8 = vsub.f32 0.0, %v294_v2  ;;  %v75_v9 = vsub.f32 0.0, %v296_v3  ;;  %190 = vtanh.f32 %v64_v5  ;;  %v47_v14 = vld [vmem:[#allocation3 + $0x10] sm:$0xff]  ;;  %v50_v18 = vld [vmem:[#allocation3 + $0x20] sm:$0xff]  ;;  %v130_v55 = vshrl.u32 %v129_v51, 7 }
  0x1f   :  { %v70_v10 = vmul.f32 1.442695, %v68_v4  ;;  %192 = vtanh.f32 %v65_v6  ;;  %v72_v11 = vmul.f32 1.442695, %v69_v7  ;;  %v52_v15 = vld [vmem:[#allocation6] sm:$0xff]  ;;  %v48_v16 = vld [vmem:[#allocation3 + $0x18] sm:$0xff] }
  0x20   :  { %v76_v12 = vmul.f32 1.442695, %v74_v8  ;;  %v78_v13 = vmul.f32 1.442695, %v75_v9  ;;  %v53_v17 = vld [vmem:[#allocation6 + $0x8] sm:$0xff]  ;;  %v55_v19 = vld [vmem:[#allocation6 + $0x10] sm:$0xff]  ;;  %v80_v22 = vsub.f32 %v47_v14, %v52_v15 }
  0x21   :  { %194 = vpow2.f32 %v70_v10  ;;  %v51_v20 = vld [vmem:[#allocation3 + $0x28] sm:$0xff]  ;;  %v81_v24 = vsub.f32 %v48_v16, %v53_v17  ;;  %v84_v26 = vsub.f32 %v50_v18, %v55_v19  ;;  %v131_v58 = vadd.s32 8, %v130_v55 }
  0x22   :  { %196 = vpow2.f32 %v72_v11  ;;  %v56_v21 = vld [vmem:[#allocation6 + $0x18] sm:$0xff]  ;;  %v133_v4 = vand.u32 127, %v129_v51  ;;  %v134_v5 = vmul.u32 128, %v130_v55 }
  0x23   :  { %198 = vpow2.f32 %v76_v12  ;;  %v85_v30 = vsub.f32 %v51_v20, %v56_v21  ;;  %v135_v9 = vmul.u32 128, %v131_v58 }
  0x24   :  { %200 = vpow2.f32 %v78_v13  ;;  %v139_v16 = vadd.s32 %v134_v5, %v133_v4 }
  0x25   :  { %v140_v18 = vadd.s32 %v135_v9, %v133_v4 }
  0x26   :  { %vm141_vm0 = vcmp.lt.s32.totalorder %v139_v16, 64 }
  0x27   :  { %vm142_vm1 = vcmp.lt.s32.totalorder %v140_v18, 64 }
  0x2b   :  { %v191_v23 = vpop.eup %190 }
  0x2c   :  { %v193_v25 = vpop.eup %192  ;;  %v94_v27 = vmul.f32 2.0, %v191_v23  ;;  %v102_v28 = vmul.f32 %v191_v23, %v191_v23 }
  0x2d   :  { %v95_v31 = vmul.f32 2.0, %v193_v25  ;;  %v103_v32 = vmul.f32 %v193_v25, %v193_v25 }
  0x2e   :  { %v195_v29 = vpop.eup %194  ;;  %v104_v35 = vsub.f32 1.0, %v102_v28 }
  0x2f   :  { %v197_v33 = vpop.eup %196  ;;  %v82_v34 = vmul.f32 %v195_v29, %v80_v22  ;;  %v105_v38 = vsub.f32 1.0, %v103_v32 }
  0x30   :  { %v199_v36 = vpop.eup %198  ;;  %v83_v37 = vmul.f32 %v197_v33, %v81_v24  ;;  %202 = vrcp.f32 %v104_v35 }
  0x31   :  { %v201_v39 = vpop.eup %200  ;;  %v86_v40 = vmul.f32 %v199_v36, %v84_v26  ;;  %v88_v41 = vmul.f32 %v82_v34, %v82_v34  ;;  %v96_v42 = vmul.f32 %v94_v27, %v82_v34  ;;  %204 = vrcp.f32 %v105_v38 }
  0x32   :  { %v87_v43 = vmul.f32 %v201_v39, %v85_v30  ;;  %v89_v44 = vmul.f32 %v83_v37, %v83_v37  ;;  %v97_v45 = vmul.f32 %v95_v31, %v83_v37  ;;  %206 = vlog2.f32 %v104_v35 }
  0x33   :  { %v90_v46 = vmul.f32 %v86_v40, %v86_v40  ;;  %v98_v47 = vmul.f32 %v96_v42, %v86_v40  ;;  %208 = vlog2.f32 %v105_v38 }
  0x34   :  { %v91_v48 = vmul.f32 %v87_v43, %v87_v43  ;;  %v99_v49 = vmul.f32 %v97_v45, %v87_v43 }
  0x35   :  { %v92_v50 = vadd.f32 %v90_v46, %v88_v41 }
  0x36   :  { %v93_v52 = vadd.f32 %v91_v48, %v89_v44 }
  0x37   :  { %v100_v53 = vsub.f32 %v92_v50, %v98_v47 }
  0x38   :  { %v101_v54 = vsub.f32 %v93_v52, %v99_v49 }
  0x39   :  { %v108_v56 = vmul.f32 0.5, %v100_v53 }
  0x3a   :  { %v109_v57 = vmul.f32 0.5, %v101_v54 }
  0x3d   :  { %v203_v59 = vpop.eup %202 }
  0x3e   :  { %v205_v60 = vpop.eup %204  ;;  %v110_v61 = vmul.f32 %v203_v59, %v108_v56 }
  0x3f   :  { %v207_v62 = vpop.eup %206  ;;  %v111_v63 = vmul.f32 %v205_v60, %v109_v57 }
  0x40   :  { %v209_v6 = vpop.eup %208  ;;  %v112_v7 = vadd.f32 %v110_v61, %v290_v0  ;;  %v117_v8 = vmul.f32 0.6931472, %v207_v62 }
  0x41   :  { %v113_v10 = vadd.f32 %v111_v63, %v292_v1  ;;  %v119_v11 = vmul.f32 0.6931472, %v209_v6 }
  0x42   :  { %v114_v12 = vadd.f32 %v112_v7, %v294_v2  ;;  %v120_v13 = vmul.f32 0.5, %v117_v8 }
  0x43   :  { %v115_v14 = vadd.f32 %v113_v10, %v296_v3  ;;  %v121_v15 = vmul.f32 0.5, %v119_v11 }
  0x44   :  { %v122_v17 = vadd.f32 %v120_v13, %v114_v12 }
  0x45   :  { %v123_v19 = vadd.f32 %v121_v15, %v115_v14 }
  0x46   :  { %v124_v20 = vadd.f32 1.837877, %v122_v17 }
  0x47   :  { %v125_v21 = vadd.f32 1.837877, %v123_v19 }
  0x48   :  { %v126_v22 = vmin.f32 %v124_v20, 23.02585 }
  0x49   :  { %v127_v0 = vmin.f32 %v125_v21, 23.02585 }
  0x4a   :  { %v143_v23 = vsel %vm141_vm0, %v126_v22, 0.0 }
  0x4b   :  { %v144_v24 = vsel %vm142_vm1, %v127_v0, 0.0 }
  0x4c   :  { %v156_v1 = vadd.f32 %v144_v24, %v143_v23 }
  0x4e   :  { %157 = vadd.xlane.f32.xlu0 %v156_v1 }
  0xd7   :  { %v158_v25 = vpop.xlane.xlu0 %157 }
  0xd8   :  { %v159_v2 = vrot.slane %v158_v25, 4 }
  0xda   :  { %v160_v26 = vadd.f32 %v159_v2, %v158_v25 }
  0xdc   :  { %v161_v27 = vrot.slane %v160_v26, 2 }
  0xde   :  { %v162_v3 = vadd.f32 %v161_v27, %v160_v26 }
  0xe0   :  { %v163_v28 = vrot.slane %v162_v3, 1 }
  0xe2   :  { %v164_v29 = vadd.f32 %v163_v28, %v162_v3 }
  0xe4   :  { %183 = vpush %v164_v29 }
 0x115   :  { %s184_s0 = spop %183 }
 0x116   :  { %167 = sst [smem:[#allocation8]] %s184_s0 }
 0x117   :  { %175 = dma.smem_to_hbm %s268_s1, 16, %s311_s2, [#allocation5]  }
 0x118   :  { %262 = dma.done.wait [#allocation5], 16  }
 0x119   :  { %263 = vsyncadd [#allocation5], 4294967280 }
 0x11a   :  { %179 = sfence }
 0x11b   :  { %180 = vsyncpa [#allocation4], 1 }
 0x11c   :  { %181 = vsyncpa [#allocation7], 1 }
 0x11d   :  { %182 = vsyncpa [#allocation5], 1 }

</bundles_post_ra>
